<compile_context>
chip_gen: v5e
topology: v5e:2x2
jax: 0.10.0
libtpu: 0.0.40
codegen_flags: <defaults>
</compile_context>

<pallas_src>
import numpy as np
import jax
import jax.numpy as jnp
from jax.experimental import pallas as pl
from jax.experimental.pallas import tpu as pltpu

# ----- module-level hyperparameters (globals in the reference script) -----
d_model = 4          # == input_size (iris: 4 features)
d_k = 8
d_v = 8
n_heads = 2
d_ff = 16
n_layers = 2
input_size = d_model
num_classes = 3

_LN_EPS = 1e-5       # torch.nn.LayerNorm default eps
_LANES = 128         # lane width
_P_ROWS = 64         # packed parameter slab rows (8-row-tile aligned sections)
_OUT_ROWS = 8        # output rows = num_classes padded to one sublane tile
_MAX_TB = 1024       # batch-lane tile cap (review: 1024-2048; 1024 keeps v5e vreg pressure low)


def _normalize_cols(x):
    """LayerNorm core over the feature axis (axis 0, 4 sublane rows); biased var, torch eps."""
    mu = jnp.mean(x, axis=0, keepdims=True)
    var = jnp.mean((x - mu) ** 2, axis=0, keepdims=True)
    return (x - mu) * jax.lax.rsqrt(var + _LN_EPS)


# =============================== Pallas kernel ===============================
def transformer_kernel(x_ref, p_ref, out_ref):
    x = x_ref[...]                               # (d_model, tb)  feature-major, lane-dense

    # --- packed slab, 8-row-tile aligned sections (layout mirrors pack_params) ---
    wA  = p_ref[0:4,  0:d_model]                 # (4,4)   (Wo@Wv)+I : attention + residual fused
    w1  = p_ref[8:24, 0:d_model]                 # (16,4)  FFN conv1 weight
    w2  = p_ref[24:28, 0:d_ff]                   # (4,16)  FFN conv2 weight
    wfc = p_ref[32:40, 0:d_model]                # (8,4)   LN2-folded classifier (rows >= 3 zero)
    vec = p_ref[40:48, :]                        # (8,128) column-vector params, one plain tile load
    b1  = p_ref[48:64, 0:1]                      # (16,1)  FFN conv1 bias

    bvo = vec[0:4, 0:1]                          # (4,1) fused attention bias  (Wo@bv + bo)
    g1  = vec[0:4, 1:2]                          # (4,1) LayerNorm #1 gamma
    be1 = vec[0:4, 2:3]                          # (4,1) LayerNorm #1 beta
    b2  = vec[0:4, 3:4]                          # (4,1) FFN conv2 bias
    bfc = vec[:,   4:5]                          # (8,1) LN2-folded fc bias (rows >= 3 zero)

    # --- attention (seq_len==1 -> softmax==1 -> context==V) + residual in ONE matmul ---
    r1 = jnp.dot(wA, x, preferred_element_type=jnp.float32) + bvo            # (4, tb)
    enc1 = _normalize_cols(r1) * g1 + be1                                     # LayerNorm #1

    # --- PoswiseFeedForwardNet (1x1 Conv1d == Linear) ---
    h1  = jnp.maximum(jnp.dot(w1, enc1, preferred_element_type=jnp.float32) + b1, 0.0)   # (16, tb)
    ffn = jnp.dot(w2, h1, preferred_element_type=jnp.float32) + b2                        # (4, tb)
    n2  = _normalize_cols(ffn + enc1)            # LayerNorm #2 core (affine folded into wfc/bfc)

    # --- classifier; (8, tb) lane-dense, sublane-aligned store (rows >= num_classes are 0) ---
    out_ref[...] = jnp.dot(wfc, n2, preferred_element_type=jnp.float32) + bfc


# ============================== tiling / wrapper =============================
def _tensorcores_per_chip():
    """Best-effort TensorCore-per-chip count (v7x megacore = 2). Any failure -> 2, which
    only costs one extra ~0.35us grid step on 1-TC chips (v5e/v6e)."""
    try:
        info = pltpu.get_tpu_info()
        for name in ("tensorcore_count", "num_tensorcores", "num_cores", "core_count"):
            v = getattr(info, name, None)
            if isinstance(v, int) and v >= 1:
                return 2 if v >= 2 else 1
    except Exception:
        pass
    return 2


def _choose_tiling(B):
    """Batch-lane tile: multiple of 128, capped at _MAX_TB, and for large batches at least
    `num_TC` tiles so the "parallel" grid axis can shard across v7x's two TensorCores."""
    if B <= _LANES:
        return _LANES, 1, _LANES
    min_tiles = _tensorcores_per_chip()
    target = pl.cdiv(B, min_tiles)
    tb = min(_MAX_TB, pl.cdiv(target, _LANES) * _LANES)
    n_tiles = pl.cdiv(B, tb)
    tb = min(tb, pl.cdiv(pl.cdiv(B, n_tiles), _LANES) * _LANES)   # trim padding waste
    n_tiles = pl.cdiv(B, tb)
    return tb, n_tiles, n_tiles * tb


def transformer_forward(x, slab):
    """x: (B, input_size) -> logits (B, num_classes). Feature-major layout inside the kernel."""
    B = x.shape[0]
    tb, n_tiles, B_pad = _choose_tiling(B)

    # Feature-major, lane-dense input (d_model, B_pad); zero-padded columns are harmless
    # (LayerNorm eps keeps them finite) and are sliced off below.
    xT = jnp.zeros((input_size, B_pad), jnp.float32).at[:, :B].set(x.astype(jnp.float32).T)

    outT = pl.pallas_call(
        transformer_kernel,
        out_shape=jax.ShapeDtypeStruct((_OUT_ROWS, B_pad), jnp.float32),
        grid_spec=pltpu.PrefetchScalarGridSpec(
            num_scalar_prefetch=0,
            grid=(n_tiles,),
            in_specs=[
                pl.BlockSpec((input_size, tb), lambda i: (0, i)),   # x tile: 4 x tb, lane-dense
                # Weight slab: constant index_map -> resident across grid steps.
                # (pl.Buffered(1) single-buffering intentionally omitted; duplicate buffer is 32 KiB.)
                pl.BlockSpec((_P_ROWS, _LANES), lambda i: (0, 0)),
            ],
            out_specs=pl.BlockSpec((_OUT_ROWS, tb), lambda i: (0, i)),
        ),
        compiler_params=pltpu.CompilerParams(
            dimension_semantics=("parallel",)),      # batch tiles shard across TCs (v7x megacore)
    )(xT, slab)

    return outT[:num_classes, :B].T


# ==================== deterministic parameter construction ===================
def _linear_init(key, fan_in, fan_out):
    """PyTorch-style uniform(-1/sqrt(fan_in), 1/sqrt(fan_in)); weight (out, in)."""
    kw, kb = jax.random.split(key)
    bound = 1.0 / np.sqrt(fan_in)
    w = jax.random.uniform(kw, (fan_out, fan_in), jnp.float32, -bound, bound)
    b = jax.random.uniform(kb, (fan_out,), jnp.float32, -bound, bound)
    return w, b


def init_params(key):
    """PyTorch-layout parameters for all encoder layers + fc (weights are (out, in)).
    LayerNorm affines get non-trivial values so the init-time folds are exercised."""
    keys = jax.random.split(key, n_layers + 1)
    layers = []
    for l in range(n_layers):
        k = jax.random.split(keys[l], 8)
        wq, bq = _linear_init(k[0], d_model, d_k * n_heads)
        wk, bk = _linear_init(k[1], d_model, d_k * n_heads)
        wv, bv = _linear_init(k[2], d_model, d_v * n_heads)
        wo, bo = _linear_init(k[3], n_heads * d_v, d_model)
        w1, b1 = _linear_init(k[4], d_model, d_ff)    # conv1, kernel_size=1
        w2, b2 = _linear_init(k[5], d_ff, d_model)    # conv2, kernel_size=1
        kg1, kb1 = jax.random.split(k[6])
        kg2, kb2 = jax.random.split(k[7])
        ln1g = jax.random.uniform(kg1, (d_model,), jnp.float32, 0.5, 1.5)
        ln1b = jax.random.uniform(kb1, (d_model,), jnp.float32, -0.2, 0.2)
        ln2g = jax.random.uniform(kg2, (d_model,), jnp.float32, 0.5, 1.5)
        ln2b = jax.random.uniform(kb2, (d_model,), jnp.float32, -0.2, 0.2)
        layers.append(dict(wq=wq, bq=bq, wk=wk, bk=bk, wv=wv, bv=bv, wo=wo, bo=bo,
                           w1=w1, b1=b1, w2=w2, b2=b2,
                           ln1g=ln1g, ln1b=ln1b, ln2g=ln2g, ln2b=ln2b))
    wfc, bfc = _linear_init(keys[-1], input_size, num_classes)
    return layers, wfc, bfc


def pack_params(L, wfc, bfc):
    """Fuse dead/foldable ops and pack everything into one (64, 128) f32 slab
    laid out for the feature-major kernel, with every section 8-row-tile aligned."""
    # seq_len == 1 => context == V.  Fuse V-proj, output-proj AND the residual add:
    #   r1T = (Wo@Wv + I) @ xT + (Wo@bv + bo)
    wA = L["wo"] @ L["wv"] + jnp.eye(d_model, dtype=jnp.float32)      # (4, 4)
    bvo = L["wo"] @ L["bv"] + L["bo"]                                  # (4,)
    # Fold LayerNorm #2 affine into the classifier (feature-major orientation):
    #   outT = (Wfc * g2[None,:]) @ n2T + (b2ln @ Wfc.T + bfc)[:, None]
    wfc_f = wfc * L["ln2g"][None, :]                                   # (num_classes, d_model)
    bfc_f = L["ln2b"] @ wfc.T + bfc                                    # (num_classes,)

    slab = jnp.zeros((_P_ROWS, _LANES), jnp.float32)
    slab = slab.at[0:4, 0:d_model].set(wA)                  # tile 0   : fused attn+residual weight
    slab = slab.at[8:24, 0:d_model].set(L["w1"])            # tiles 1-2: FFN conv1 weight (16,4)
    slab = slab.at[24:28, 0:d_ff].set(L["w2"])              # tile 3   : FFN conv2 weight (4,16)
    slab = slab.at[32:32 + num_classes, 0:d_model].set(wfc_f)  # tile 4: folded classifier (rows>=3 zero)
    # tile 5: all column-vector parameters
    slab = slab.at[40:44, 0].set(bvo)
    slab = slab.at[40:44, 1].set(L["ln1g"])
    slab = slab.at[40:44, 2].set(L["ln1b"])
    slab = slab.at[40:44, 3].set(L["b2"])
    slab = slab.at[40:40 + num_classes, 4].set(bfc_f)        # rows >= num_classes stay 0
    # tiles 6-7: FFN conv1 bias as a (16,1) column
    slab = slab.at[48:64, 0].set(L["b1"])
    return slab


# ====================== pure-JAX reference (verification) ====================
def _ln_ref(x, g, b):
    mu = jnp.mean(x, axis=-1, keepdims=True)
    var = jnp.mean((x - mu) ** 2, axis=-1, keepdims=True)   # biased, like torch
    return (x - mu) * jax.lax.rsqrt(var + _LN_EPS) * g + b


def reference_forward(x, L, wfc, bfc):
    """Faithful transcription of the PyTorch forward (last encoder layer only, exactly as
    Encoder.forward computes it), including the Q/K/softmax path."""
    q = x @ L["wq"].T + L["bq"]
    k = x @ L["wk"].T + L["bk"]
    v = x @ L["wv"].T + L["bv"]
    ctx = []
    for h in range(n_heads):
        qh = q[:, h * d_k:(h + 1) * d_k]
        kh = k[:, h * d_k:(h + 1) * d_k]
        vh = v[:, h * d_v:(h + 1) * d_v]
        s = jnp.sum(qh * kh, axis=-1, keepdims=True) / np.sqrt(d_k)  # seq_len == 1
        a = jax.nn.softmax(s, axis=-1)                               # == 1.0
        ctx.append(a * vh)
    context = jnp.concatenate(ctx, axis=-1)
    attn_out = context @ L["wo"].T + L["bo"]
    enc1 = _ln_ref(attn_out + x, L["ln1g"], L["ln1b"])
    h1 = jnp.maximum(enc1 @ L["w1"].T + L["b1"], 0.0)
    ffn = h1 @ L["w2"].T + L["b2"]
    enc2 = _ln_ref(ffn + enc1, L["ln2g"], L["ln2b"])
    return enc2 @ wfc.T + bfc


if __name__ == "__main__":
    root = jax.random.PRNGKey(0)
    k_params, k_x = jax.random.split(root)

    batch = 8
    x = jax.random.normal(k_x, (batch, input_size), dtype=jnp.float32)

    layers, wfc, bfc = init_params(k_params)
    # Only the last encoder layer reaches the output (Encoder.forward keeps only the last
    # result and always feeds the ORIGINAL inputs).
    slab = pack_params(layers[-1], wfc, bfc)

    fwd = jax.jit(transformer_forward)          # keep the pallas_call fused inside one jit
    out = jax.block_until_ready(fwd(x, slab))

    ref = reference_forward(x, layers[-1], wfc, bfc)
    np.testing.assert_allclose(np.asarray(out), np.asarray(ref), rtol=1e-4, atol=1e-4)

    assert out.shape == (batch, num_classes)
    print("KERNEL_OK")
</pallas_src>

<mosaic_0001>
module attributes {stable_mosaic.version = 11 : i64} {
  func.func @transformer_kernel(%arg0: i32, %arg1: memref<4x128xf32, #tpu.memory_space<vmem>>, %arg2: memref<64x128xf32, #tpu.memory_space<vmem>>, %arg3: memref<8x128xf32, #tpu.memory_space<vmem>>) attributes {dimension_semantics = [#tpu.dimension_semantics<parallel>], iteration_bounds = array<i64: 1>, scalar_prefetch = 0 : i64, scratch_operands = 0 : i64, tpu.core_type = #tpu.core_type<tc>, window_params = [{transform_indices = @transform_0, window_bounds = array<i64: 4, 128>}, {pipeline_mode = #tpu.pipeline_mode<synchronous>, transform_indices = @transform_1, window_bounds = array<i64: 64, 128>}, {transform_indices = @transform_2, window_bounds = array<i64: 8, 128>}]} {
    %c0 = arith.constant 0 : index
    %c0_0 = arith.constant 0 : index
    %0 = vector.load %arg1[%c0, %c0_0] : memref<4x128xf32, #tpu.memory_space<vmem>>, vector<4x128xf32>
    %c0_1 = arith.constant 0 : index
    %c0_2 = arith.constant 0 : index
    %1 = vector.load %arg2[%c0_1, %c0_2] : memref<64x128xf32, #tpu.memory_space<vmem>>, vector<4x4xf32>
    %c8 = arith.constant 8 : index
    %c0_3 = arith.constant 0 : index
    %2 = vector.load %arg2[%c8, %c0_3] : memref<64x128xf32, #tpu.memory_space<vmem>>, vector<16x4xf32>
    %c24 = arith.constant 24 : index
    %c0_4 = arith.constant 0 : index
    %3 = vector.load %arg2[%c24, %c0_4] : memref<64x128xf32, #tpu.memory_space<vmem>>, vector<4x16xf32>
    %c32 = arith.constant 32 : index
    %c0_5 = arith.constant 0 : index
    %4 = vector.load %arg2[%c32, %c0_5] : memref<64x128xf32, #tpu.memory_space<vmem>>, vector<8x4xf32>
    %c40 = arith.constant 40 : index
    %c0_6 = arith.constant 0 : index
    %5 = vector.load %arg2[%c40, %c0_6] : memref<64x128xf32, #tpu.memory_space<vmem>>, vector<8x128xf32>
    %c48 = arith.constant 48 : index
    %c0_7 = arith.constant 0 : index
    %6 = vector.load %arg2[%c48, %c0_7] : memref<64x128xf32, #tpu.memory_space<vmem>>, vector<16x1xf32>
    %7 = vector.extract_strided_slice %5 {offsets = [0, 0], sizes = [4, 1], strides = [1, 1]} : vector<8x128xf32> to vector<4x1xf32>
    %8 = vector.extract_strided_slice %5 {offsets = [0, 1], sizes = [4, 1], strides = [1, 1]} : vector<8x128xf32> to vector<4x1xf32>
    %9 = vector.extract_strided_slice %5 {offsets = [0, 2], sizes = [4, 1], strides = [1, 1]} : vector<8x128xf32> to vector<4x1xf32>
    %10 = vector.extract_strided_slice %5 {offsets = [0, 3], sizes = [4, 1], strides = [1, 1]} : vector<8x128xf32> to vector<4x1xf32>
    %11 = vector.extract_strided_slice %5 {offsets = [0, 4], sizes = [8, 1], strides = [1, 1]} : vector<8x128xf32> to vector<8x1xf32>
    %cst = arith.constant dense<0.000000e+00> : vector<4x128xf32>
    %12 = tpu.matmul %1, %0, %cst {dimension_numbers = #tpu.dot_dimension_numbers<[1], [0], [0], [1], [0, 0, 1, 1], [], []>} : vector<4x4xf32>, vector<4x128xf32>, vector<4x128xf32> -> vector<4x128xf32>
    %13 = vector.broadcast %7 : vector<4x1xf32> to vector<4x128xf32>
    %14 = arith.addf %12, %13 : vector<4x128xf32>
    %cst_8 = arith.constant dense<0.000000e+00> : vector<128xf32>
    %15 = vector.multi_reduction <add>, %14, %cst_8 [0] : vector<4x128xf32> to vector<128xf32>
    %16 = vector.shape_cast %15 : vector<128xf32> to vector<1x128xf32>
    %cst_9 = arith.constant 4.000000e+00 : f32
    %17 = vector.broadcast %cst_9 : f32 to vector<1x128xf32>
    %18 = arith.divf %16, %17 : vector<1x128xf32>
    %19 = vector.broadcast %18 : vector<1x128xf32> to vector<4x128xf32>
    %20 = arith.subf %14, %19 : vector<4x128xf32>
    %21 = arith.mulf %20, %20 : vector<4x128xf32>
    %cst_10 = arith.constant dense<0.000000e+00> : vector<128xf32>
    %22 = vector.multi_reduction <add>, %21, %cst_10 [0] : vector<4x128xf32> to vector<128xf32>
    %23 = vector.shape_cast %22 : vector<128xf32> to vector<1x128xf32>
    %cst_11 = arith.constant 4.000000e+00 : f32
    %24 = vector.broadcast %cst_11 : f32 to vector<1x128xf32>
    %25 = arith.divf %23, %24 : vector<1x128xf32>
    %26 = vector.broadcast %18 : vector<1x128xf32> to vector<4x128xf32>
    %27 = arith.subf %14, %26 : vector<4x128xf32>
    %cst_12 = arith.constant 9.99999974E-6 : f32
    %28 = vector.broadcast %cst_12 : f32 to vector<1x128xf32>
    %29 = arith.addf %25, %28 : vector<1x128xf32>
    %30 = math.rsqrt %29 : vector<1x128xf32>
    %31 = vector.broadcast %30 : vector<1x128xf32> to vector<4x128xf32>
    %32 = arith.mulf %27, %31 : vector<4x128xf32>
    %33 = vector.broadcast %8 : vector<4x1xf32> to vector<4x128xf32>
    %34 = arith.mulf %32, %33 : vector<4x128xf32>
    %35 = vector.broadcast %9 : vector<4x1xf32> to vector<4x128xf32>
    %36 = arith.addf %34, %35 : vector<4x128xf32>
    %cst_13 = arith.constant dense<0.000000e+00> : vector<16x128xf32>
    %37 = tpu.matmul %2, %36, %cst_13 {dimension_numbers = #tpu.dot_dimension_numbers<[1], [0], [0], [1], [0, 0, 1, 1], [], []>} : vector<16x4xf32>, vector<4x128xf32>, vector<16x128xf32> -> vector<16x128xf32>
    %38 = vector.broadcast %6 : vector<16x1xf32> to vector<16x128xf32>
    %39 = arith.addf %37, %38 : vector<16x128xf32>
    %cst_14 = arith.constant 0.000000e+00 : f32
    %40 = vector.broadcast %cst_14 : f32 to vector<16x128xf32>
    %41 = arith.maximumf %39, %40 : vector<16x128xf32>
    %cst_15 = arith.constant dense<0.000000e+00> : vector<4x128xf32>
    %42 = tpu.matmul %3, %41, %cst_15 {dimension_numbers = #tpu.dot_dimension_numbers<[1], [0], [0], [1], [0, 0, 1, 1], [], []>} : vector<4x16xf32>, vector<16x128xf32>, vector<4x128xf32> -> vector<4x128xf32>
    %43 = vector.broadcast %10 : vector<4x1xf32> to vector<4x128xf32>
    %44 = arith.addf %42, %43 : vector<4x128xf32>
    %45 = arith.addf %44, %36 : vector<4x128xf32>
    %cst_16 = arith.constant dense<0.000000e+00> : vector<128xf32>
    %46 = vector.multi_reduction <add>, %45, %cst_16 [0] : vector<4x128xf32> to vector<128xf32>
    %47 = vector.shape_cast %46 : vector<128xf32> to vector<1x128xf32>
    %cst_17 = arith.constant 4.000000e+00 : f32
    %48 = vector.broadcast %cst_17 : f32 to vector<1x128xf32>
    %49 = arith.divf %47, %48 : vector<1x128xf32>
    %50 = vector.broadcast %49 : vector<1x128xf32> to vector<4x128xf32>
    %51 = arith.subf %45, %50 : vector<4x128xf32>
    %52 = arith.mulf %51, %51 : vector<4x128xf32>
    %cst_18 = arith.constant dense<0.000000e+00> : vector<128xf32>
    %53 = vector.multi_reduction <add>, %52, %cst_18 [0] : vector<4x128xf32> to vector<128xf32>
    %54 = vector.shape_cast %53 : vector<128xf32> to vector<1x128xf32>
    %cst_19 = arith.constant 4.000000e+00 : f32
    %55 = vector.broadcast %cst_19 : f32 to vector<1x128xf32>
    %56 = arith.divf %54, %55 : vector<1x128xf32>
    %57 = vector.broadcast %49 : vector<1x128xf32> to vector<4x128xf32>
    %58 = arith.subf %45, %57 : vector<4x128xf32>
    %cst_20 = arith.constant 9.99999974E-6 : f32
    %59 = vector.broadcast %cst_20 : f32 to vector<1x128xf32>
    %60 = arith.addf %56, %59 : vector<1x128xf32>
    %61 = math.rsqrt %60 : vector<1x128xf32>
    %62 = vector.broadcast %61 : vector<1x128xf32> to vector<4x128xf32>
    %63 = arith.mulf %58, %62 : vector<4x128xf32>
    %cst_21 = arith.constant dense<0.000000e+00> : vector<8x128xf32>
    %64 = tpu.matmul %4, %63, %cst_21 {dimension_numbers = #tpu.dot_dimension_numbers<[1], [0], [0], [1], [0, 0, 1, 1], [], []>} : vector<8x4xf32>, vector<4x128xf32>, vector<8x128xf32> -> vector<8x128xf32>
    %65 = vector.broadcast %11 : vector<8x1xf32> to vector<8x128xf32>
    %66 = arith.addf %64, %65 : vector<8x128xf32>
    %c0_22 = arith.constant 0 : index
    %c0_23 = arith.constant 0 : index
    %67 = vector.load %arg3[%c0_22, %c0_23] : memref<8x128xf32, #tpu.memory_space<vmem>>, vector<8x128xf32>
    tpu.vector_store %arg3[%c0_22, %c0_23], %66 {strides = array<i32>} : memref<8x128xf32, #tpu.memory_space<vmem>>, vector<8x128xf32>,
    return
  }
  func.func @transform_0(%arg0: i32) -> (i32, i32) {
    %c0_i32 = arith.constant 0 : i32
    %c0_i32_0 = arith.constant 0 : i32
    return %c0_i32, %arg0 : i32, i32
  }
  func.func @transform_1(%arg0: i32) -> (i32, i32) {
    %c0_i32 = arith.constant 0 : i32
    %c0_i32_0 = arith.constant 0 : i32
    %c0_i32_1 = arith.constant 0 : i32
    return %c0_i32, %c0_i32_0 : i32, i32
  }
  func.func @transform_2(%arg0: i32) -> (i32, i32) {
    %c0_i32 = arith.constant 0 : i32
    %c0_i32_0 = arith.constant 0 : i32
    return %c0_i32, %arg0 : i32, i32
  }
}

</mosaic_0001>

<bundles_post_ra>
// kernel: transformer_forward.1
= control target key start
LH: loop header
LB: loop body
LE: loop exit
PB: predicated region body
PF: predicated region fallthrough
CT: control target
= control target key end

     0   :  { %7 = vsyncpa [#allocation3], 0  ;;  %s312_s12 = smov [#allocation2]   ;;  %s313_s14 = smov 128   ;;  %s369_s0 = inlined_call_operand.vmem [shape: f32[4,128], index: 0, kind: input, shape index: {}]   ;;  %s370_s1 = inlined_call_operand.hbm [shape: f32[64,128], index: 1, kind: input, shape index: {}]   ;;  %s371_s2 = inlined_call_operand.vmem [shape: f32[8,128], index: 2, kind: output, shape index: {}]  }
   0x1   :  { %s14_s11 = sshll.u32 %s370_s1, 4  ;;  %s16_s13 = sshll.u32 %s312_s12, 4  ;;  %s15_s11 = int_to_ptr.hbm [resolvable:$true] %s14_s11  ;;  %s17_s13 = int_to_ptr.vmem [resolvable:$true] %s16_s13 }
   0x2   :  { %s314_s15 = smov 8  }
   0x3   :  { %22 = dma.hbm_to_vmem [thread:$0]  %s15_s11, 1024, %s17_s13, [#allocation3], %s313_s14, %s313_s14, %s314_s15  }
   0x4   :  { %310 = dma.done.wait [#allocation3], 1024  }
   0x5   :  { %311 = vsyncadd [#allocation3], 4294966272  ;;  %v315_v0 = vmov 0   ;;  %v316_v1 = vmov 2   ;;  %vm45_vm0 = vcmask 1043456   ;;  %vm41_vm1 = vcmask 31744  }
   0x6   :  { %272 = vset.pattern.permute.xlu0 %v315_v0  ;;  %276 = vset.pattern.permute.xlu2 %v315_v0  ;;  %v27_v2 = vld [vmem:[%s369_s0] sm:$0xf]  ;;  %v342_v4 = vld [vmem:[#allocation2 + $0x28] sm:$0xff]  ;;  %v317_v5 = vmov 1   ;;  %v318_v6 = vmov 4.0   ;;  %v35_v35 = vld [vmem:[#allocation2 + $0x38] sm:$0xff] }
   0x7   :  { %274 = vset.pattern.permute.xlu1 %v316_v1  ;;  %v28_v3 = vld [vmem:[#allocation2] sm:$0xf]  ;;  %255 = vmatpush.msk.msra.mxu0 %vm45_vm0, %v27_v2  ;;  %280 = vrcp.f32 %v318_v6  ;;  %v34_v36 = vld [vmem:[#allocation2 + $0x30] sm:$0xff]  ;;  %v29_v49 = vld [vmem:[#allocation2 + $0x8] sm:$0xff]  ;;  %v319_v51 = vmov 3   ;;  %vm164_vm6 = vcmask 130048  }
   0x8   :  { %38 = vperm.xlu0 %272, %v342_v4   ;;  %256 = vmatmul.msk.f32.vlgmr.msra.gmra.mxu0 %vm41_vm1, %v28_v3  ;;  %v30_v50 = vld [vmem:[#allocation2 + $0x10] sm:$0xff]  ;;  %v31_v60 = vld [vmem:[#allocation2 + $0x18] sm:$0xf] }
   0x9   :  { %112 = vperm.xlu1 %274, %v342_v4   ;;  %118 = vperm.xlu2 %276, %v34_v36  }
   0xd   :  { %v281_v7 = vpop.eup %280 }
   0xe   :  { %v77_v8 = vmul.f32 4.0, %v281_v7  ;;  %vm81_vm2 = vweird.f32 %v281_v7 }
  0x10   :  { %273 = vset.pattern.permute.xlu0 %v317_v5  ;;  %v78_v12 = vsub.f32 1.0, %v77_v8 }
  0x11   :  { %107 = vperm.xlu0 %273, %v342_v4   ;;  %275 = vset.pattern.permute.xlu1 %v315_v0 }
  0x12   :  { %v79_v15 = vmul.f32 %v281_v7, %v78_v12  ;;  %123 = vperm.xlu1 %275, %v35_v35   ;;  %277 = vset.pattern.permute.xlu2 %v319_v51 }
  0x13   :  { %161 = vperm.xlu2 %277, %v342_v4  }
  0x14   :  { %v80_v18 = vadd.f32 %v281_v7, %v79_v15 }
  0x16   :  { %v350_v21 = vsel %vm81_vm2, %v281_v7, %v80_v18 }
  0x63   :  { %v119_v53 = vpop.permute.xlu2 %118 }
  0x6d   :  { %v162_v61 = vpop.permute.xlu2 %161 }
  0x7a   :  { %v39_v9 = vpop.permute.xlu0 %38 }
  0x7b   :  { %v113_v46 = vpop.permute.xlu1 %112 }
  0x83   :  { %v108_v43 = vpop.permute.xlu0 %107 }
  0x84   :  { %v124_v54 = vpop.permute.xlu1 %123 }
  0x85   :  { %v66_v10 = vpop.f32.mrf.mxu0 }
  0x86   :  { %v67_v11 = vadd.f32 %v66_v10, %v39_v9 }
  0x88   :  { %v69_v13 = vsel %vm45_vm0, %v67_v11, 0.0 }
  0x89   :  { %v70_v14 = vrot.slane %v69_v13, 4 }
  0x8b   :  { %v71_v16 = vadd.f32 %v70_v14, %v69_v13 }
  0x8d   :  { %v72_v17 = vrot.slane %v71_v16, 2 }
  0x8f   :  { %v73_v19 = vadd.f32 %v72_v17, %v71_v16  ;;  %v320_v17 = vmov 4  }
  0x90   :  { %278 = vset.pattern.permute.xlu1 %v320_v17  ;;  %279 = vset.pattern.permute.xlu0 %v320_v17 }
  0x91   :  { %v74_v20 = vrot.slane %v73_v19, 1  ;;  %220 = vperm.xlu1 %278, %v342_v4  }
  0x93   :  { %v75_v22 = vadd.f32 %v74_v20, %v73_v19 }
  0x95   :  { %v83_v23 = vmul.f32 %v350_v21, %v75_v22 }
  0x97   :  { %v84_v24 = vsub.f32 %v67_v11, %v83_v23 }
  0x99   :  { %v85_v25 = vmul.f32 %v84_v24, %v84_v24 }
  0x9b   :  { %v86_v26 = vsel %vm45_vm0, %v85_v25, 0.0 }
  0x9c   :  { %v87_v27 = vrot.slane %v86_v26, 4 }
  0x9e   :  { %v88_v28 = vadd.f32 %v87_v27, %v86_v26 }
  0xa0   :  { %v89_v29 = vrot.slane %v88_v28, 2 }
  0xa2   :  { %v90_v30 = vadd.f32 %v89_v29, %v88_v28 }
  0xa4   :  { %v91_v31 = vrot.slane %v90_v30, 1 }
  0xa6   :  { %v92_v32 = vadd.f32 %v91_v31, %v90_v30  ;;  %v32_v31 = vld [vmem:[#allocation2 + $0x20] sm:$0xff] }
  0xa8   :  { %v93_v33 = vmul.f32 %v92_v32, %v350_v21 }
  0xaa   :  { %v94_v34 = vadd.f32 1e-05, %v93_v33 }
  0xac   :  { %282 = vrsqrt.f32 %v94_v34  ;;  %vm101_vm4 = vweird.f32 %v94_v34 }
  0xb2   :  { %v283_v37 = vpop.eup %282 }
  0xb3   :  { %v96_v38 = vmul.f32 %v283_v37, %v94_v34  ;;  %vm102_vm3 = vweird.f32 %v283_v37 }
  0xb4   :  { %vm103_vm5 = vmor %vm101_vm4, %vm102_vm3 }
  0xb5   :  { %v97_v39 = vmul.f32 %v283_v37, %v96_v38 }
  0xb7   :  { %v98_v40 = vmul.f32 0.5, %v97_v39 }
  0xb9   :  { %v99_v41 = vsub.f32 1.5, %v98_v40 }
  0xbb   :  { %v100_v42 = vmul.f32 %v283_v37, %v99_v41 }
  0xbd   :  { %v104_v44 = vsel %vm103_vm5, %v283_v37, %v100_v42 }
  0xbe   :  { %v105_v45 = vmul.f32 %v104_v44, %v84_v24 }
  0xc0   :  { %v110_v47 = vmul.f32 %v108_v43, %v105_v45 }
  0xc2   :  { %v115_v48 = vadd.f32 %v113_v46, %v110_v47 }
  0xc4   :  { %257 = vmatpush.msk.msra.mxu1 %vm45_vm0, %v115_v48 }
  0xc5   :  { %258 = vmatmul.msk.f32.vlgmr.msra.gmra.mxu1 %vm41_vm1, %v29_v49 }
  0xcd   :  { %259 = vmatmul.msk.f32.gmra.mxu1 %vm41_vm1, %v30_v50 }
 0x103   :  { %v221_v4 = vpop.permute.xlu1 %220 }
 0x142   :  { %v152_v52 = vpop.f32.mrf.mxu1 }
 0x143   :  { %v153_v56 = vadd.f32 %v152_v52, %v119_v53 }
 0x145   :  { %v158_v59 = vmax.f32 %v153_v56, 0.0 }
 0x14a   :  { %v155_v55 = vpop.f32.mrf.mxu1 }
 0x14b   :  { %v156_v57 = vadd.f32 %v155_v55, %v124_v54 }
 0x14d   :  { %v159_v58 = vmax.f32 %v156_v57, 0.0 }
 0x14f   :  { %182 = vmatpush.msra.mxu2 %v159_v58 }
 0x151   :  { %183 = vmatpush.msra.mxu2 %v158_v59 }
 0x152   :  { %260 = vmatmul.msk.f32.vlgmr.msra.gmra.mxu2 %vm164_vm6, %v31_v60 }
 0x1d5   :  { %v185_v62 = vpop.f32.mrf.mxu2 }
 0x1d6   :  { %v186_v63 = vadd.f32 %v185_v62, %v162_v61 }
 0x1d8   :  { %v188_v0 = vadd.f32 %v186_v63, %v115_v48 }
 0x1da   :  { %v189_v1 = vsel %vm45_vm0, %v188_v0, 0.0 }
 0x1db   :  { %v190_v2 = vrot.slane %v189_v1, 4 }
 0x1dd   :  { %v191_v3 = vadd.f32 %v190_v2, %v189_v1 }
 0x1df   :  { %v192_v5 = vrot.slane %v191_v3, 2 }
 0x1e1   :  { %v193_v6 = vadd.f32 %v192_v5, %v191_v3 }
 0x1e3   :  { %v194_v7 = vrot.slane %v193_v6, 1 }
 0x1e5   :  { %v195_v8 = vadd.f32 %v194_v7, %v193_v6 }
 0x1e7   :  { %v196_v9 = vmul.f32 %v195_v8, %v350_v21 }
 0x1e9   :  { %v197_v10 = vsub.f32 %v188_v0, %v196_v9 }
 0x1eb   :  { %v198_v11 = vmul.f32 %v197_v10, %v197_v10 }
 0x1ed   :  { %v199_v12 = vsel %vm45_vm0, %v198_v11, 0.0 }
 0x1ee   :  { %v200_v13 = vrot.slane %v199_v12, 4 }
 0x1f0   :  { %v201_v14 = vadd.f32 %v200_v13, %v199_v12 }
 0x1f2   :  { %v202_v15 = vrot.slane %v201_v14, 2 }
 0x1f4   :  { %v203_v16 = vadd.f32 %v202_v15, %v201_v14 }
 0x1f6   :  { %v204_v18 = vrot.slane %v203_v16, 1 }
 0x1f8   :  { %v205_v19 = vadd.f32 %v204_v18, %v203_v16 }
 0x1fa   :  { %v206_v20 = vmul.f32 %v205_v19, %v350_v21 }
 0x1fc   :  { %v207_v22 = vadd.f32 1e-05, %v206_v20 }
 0x1fe   :  { %284 = vrsqrt.f32 %v207_v22  ;;  %vm214_vm8 = vweird.f32 %v207_v22 }
 0x204   :  { %v285_v23 = vpop.eup %284 }
 0x205   :  { %v209_v24 = vmul.f32 %v285_v23, %v207_v22  ;;  %vm215_vm7 = vweird.f32 %v285_v23 }
 0x206   :  { %vm216_vm9 = vmor %vm214_vm8, %vm215_vm7 }
 0x207   :  { %v210_v25 = vmul.f32 %v285_v23, %v209_v24 }
 0x209   :  { %v211_v26 = vmul.f32 0.5, %v210_v25 }
 0x20b   :  { %v212_v27 = vsub.f32 1.5, %v211_v26 }
 0x20d   :  { %v213_v28 = vmul.f32 %v285_v23, %v212_v27 }
 0x20f   :  { %v217_v29 = vsel %vm216_vm9, %v285_v23, %v213_v28 }
 0x210   :  { %v218_v30 = vmul.f32 %v217_v29, %v197_v10 }
 0x212   :  { %261 = vmatpush.msk.msra.mxu3 %vm45_vm0, %v218_v30 }
 0x213   :  { %262 = vmatmul.msk.f32.vlgmr.msra.gmra.mxu3 %vm41_vm1, %v32_v31 }
 0x296   :  { %v246_v21 = vpop.f32.mrf.mxu3 }
 0x297   :  { %v247_v32 = vadd.f32 %v246_v21, %v221_v4 }
 0x299   :  { %249 = vst [vmem:[%s371_s2] sm:$0xff] %v247_v32 }
 0x29a   :  { %254 = vsyncpa [#allocation3], 1 }

</bundles_post_ra>
